<compile_context>
chip_gen: v7x
topology: tpu7x:2x2x1
jax: 0.10.0
libtpu: 0.0.40
codegen_flags: <defaults>
</compile_context>

<pallas_src>
import jax
import jax.numpy as jnp
from jax.experimental import pallas as pl
from jax.experimental.pallas import tpu as pltpu


def _make_head_kernel(has_xnum: bool, use_reduce: bool):
    """Build the Predictor-head kernel.

    Refs (in order):
      h_ref   : [tb, D]   cls-token hidden states (VMEM)
      xn_ref  : [tb, 1]   x_num for the cls token (VMEM)          [only if has_xnum]
      w_ref   : [1, D]    weight row (reduce path)  or  [D, C]    (matmul path)
      b_ref   : [1, 1]    bias scalar (SMEM, reduce) or  [1, C]   (VMEM)
      emb_ref : [tb, D]   output: input_embedding                 [only if has_xnum]
      out_ref : [tb, C]   output: linear head
    """

    def kernel(*refs):
        idx = 0
        h_ref = refs[idx]; idx += 1
        xn_ref = None
        if has_xnum:
            xn_ref = refs[idx]; idx += 1
        w_ref = refs[idx]; idx += 1
        b_ref = refs[idx]; idx += 1
        emb_ref = None
        if has_xnum:
            emb_ref = refs[idx]; idx += 1
        out_ref = refs[idx]

        h = h_ref[...]                                  # [tb, D]
        if has_xnum:
            emb = h * xn_ref[...]                       # broadcast [tb, 1] over [tb, D]
            emb_ref[...] = emb.astype(emb_ref.dtype)
        else:
            emb = h                                     # identity; not re-emitted

        # Dropout is identity at inference time.
        emb32 = emb.astype(jnp.float32)                 # f32 accumulation (PyTorch parity)
        if use_reduce:
            # C == 1: VPU multiply + XLU row-reduce; scalar bias from SMEM.
            w32 = w_ref[...].astype(jnp.float32)        # [1, D]
            out = jnp.sum(emb32 * w32, axis=-1, keepdims=True) + b_ref[0, 0]
        else:
            out = jnp.dot(emb32, w_ref[...].astype(jnp.float32),
                          preferred_element_type=jnp.float32)
            out = out + b_ref[...].astype(jnp.float32)
        out_ref[...] = out.astype(out_ref.dtype)

    return kernel


def _pick_batch_tile(B: int, D: int, itemsize: int = 4,
                     target_block_bytes: int = 2 << 20) -> int:
    """Rows per block targeting ~2 MiB per (tb, D) tile.

    Double-buffered h + emb blocks then occupy ~4x the block (<= 8 MiB),
    comfortably inside v5e's 16 MiB scoped-VMEM default and v7x's 64 MiB VMEM.
    """
    rows = max(8, (target_block_bytes // (itemsize * max(D, 1))) // 8 * 8)
    if rows >= B:
        # Whole batch fits one block.  If B is big enough, split in two
        # multiple-of-8 pieces so v7x's two TensorCores both get a grid step.
        if B >= 16:
            return max(8, (B // 2) // 8 * 8)
        return B
    return rows


def predictor_forward(last_hidden_state, x_num, weight, bias):
    """Pallas-backed Predictor head ('cls' pooling, eval mode).

    last_hidden_state: [B, S, D] float
    x_num:             [B, S] float or None
    weight:            [D, C] float   (transposed PyTorch nn.Linear weight)
    bias:              [C]    float
    Returns (input_embedding [B, D], outputs [B, C]).
    """
    B, S, D = last_hidden_state.shape
    C = weight.shape[1]
    dtype = last_hidden_state.dtype
    itemsize = jnp.dtype(dtype).itemsize

    has_xnum = x_num is not None
    use_reduce = (C == 1)

    # Fuse the cls slice into the BlockSpec when the lane constraint allows it:
    # view [B, S, D] as [B, S*D]; block (tb, D) at column 0 is exactly the cls
    # row, DMA'd straight from HBM (strided read, no extra pass).
    fuse_cls = (D % 128 == 0) or (S == 1)
    if fuse_cls:
        h_in = last_hidden_state.reshape(B, S * D)       # layout-preserving view
    else:
        # TODO(synk): D not a multiple of 128 -> fall back to a wrapper slice
        # (one extra small HBM pass), since a (tb, D) block on [B, S*D] would
        # violate Mosaic's last-dim (128) constraint.
        h_in = last_hidden_state[:, 0, :]                # [B, D]

    tb = _pick_batch_tile(B, D, itemsize)
    grid = (pl.cdiv(B, tb),)

    in_specs = [pl.BlockSpec((tb, D), lambda i: (i, 0))]
    args = [h_in]

    if has_xnum:
        xn_cls = x_num[:, :1].astype(dtype)              # [B, 1] -- B*itemsize bytes, negligible
        in_specs.append(pl.BlockSpec((tb, 1), lambda i: (i, 0)))
        args.append(xn_cls)

    if use_reduce:
        # Lane-dense weight row, resident across all grid steps.
        in_specs.append(pl.BlockSpec((1, D), lambda i: (0, 0)))
        args.append(weight.reshape(1, D))
        # Scalar bias in SMEM (avoids an (8,128)-padded VMEM tile for 1 value).
        in_specs.append(pl.BlockSpec((1, 1), lambda i: (0, 0),
                                     memory_space=pltpu.MemorySpace.SMEM))
        args.append(bias.reshape(1, 1).astype(jnp.float32))
    else:
        in_specs.append(pl.BlockSpec((D, C), lambda i: (0, 0)))
        args.append(weight)
        in_specs.append(pl.BlockSpec((1, C), lambda i: (0, 0)))
        args.append(bias.reshape(1, C))

    out_spec_out = pl.BlockSpec((tb, C), lambda i: (i, 0))
    if has_xnum:
        out_shape = (jax.ShapeDtypeStruct((B, D), dtype),
                     jax.ShapeDtypeStruct((B, C), dtype))
        out_specs = (pl.BlockSpec((tb, D), lambda i: (i, 0)), out_spec_out)
    else:
        out_shape = jax.ShapeDtypeStruct((B, C), dtype)
        out_specs = out_spec_out

    result = pl.pallas_call(
        _make_head_kernel(has_xnum, use_reduce),
        grid=grid,
        out_shape=out_shape,
        in_specs=in_specs,
        out_specs=out_specs,
        compiler_params=pltpu.CompilerParams(
            dimension_semantics=("parallel",)),
    )(*args)

    if has_xnum:
        emb, out = result
    else:
        out = result
        # input_embedding is an identity copy of the cls row; return it lazily
        # from the wrapper instead of writing it back from the kernel.
        emb = last_hidden_state[:, 0, :] if fuse_cls else h_in
    return emb, out


def stub_base_model(input_ids, attention_masks, embed_table):
    """Deterministic stand-in for the HF base model (glue, plain JAX)."""
    h = embed_table[input_ids]                           # [B, S, D]
    return h * attention_masks[:, :, None].astype(h.dtype)


if __name__ == "__main__":
    # Small shapes consistent with the module: batch=2, seq=8, hidden=128, n_classes=1.
    B, S, D, C, vocab = 2, 8, 128, 1, 50

    key = jax.random.PRNGKey(0)
    k_ids, k_emb, k_xnum, k_w, k_b, k_w2, k_b2, k_emb2 = jax.random.split(key, 8)

    input_ids = jax.random.randint(k_ids, (B, S), 0, vocab)
    attention_masks = jnp.ones((B, S), dtype=jnp.int32)
    embed_table = jax.random.normal(k_emb, (vocab, D), dtype=jnp.float32)
    x_num = jax.random.uniform(k_xnum, (B, S), dtype=jnp.float32)

    # Deterministic "trained" nn.Linear(D, 1) params (weight already transposed).
    weight = jax.random.normal(k_w, (D, C), dtype=jnp.float32) * 0.02
    bias = jax.random.normal(k_b, (C,), dtype=jnp.float32) * 0.02

    # Base model (glue) -> Pallas head.
    last_hidden_state = stub_base_model(input_ids, attention_masks, embed_table)

    # --- main path: fused cls slice, x_num present, n_classes=1 (reduce path) ---
    emb, out = predictor_forward(last_hidden_state, x_num, weight, bias)
    jax.block_until_ready((emb, out))

    ref_emb = (last_hidden_state * x_num[:, :, None])[:, 0, :]
    ref_out = jnp.sum(ref_emb * weight.reshape(1, D), axis=-1, keepdims=True) + bias
    assert emb.shape == (B, D) and out.shape == (B, C)
    assert jnp.allclose(emb, ref_emb, atol=1e-5, rtol=1e-5)
    assert jnp.allclose(out, ref_out, atol=1e-5, rtol=1e-5)

    # --- x_num=None specialization (kernel emits only `out`; emb is identity slice) ---
    emb_n, out_n = predictor_forward(last_hidden_state, None, weight, bias)
    jax.block_until_ready((emb_n, out_n))
    ref_emb_n = last_hidden_state[:, 0, :]
    ref_out_n = jnp.sum(ref_emb_n * weight.reshape(1, D), axis=-1, keepdims=True) + bias
    assert jnp.allclose(emb_n, ref_emb_n, atol=1e-5, rtol=1e-5)
    assert jnp.allclose(out_n, ref_out_n, atol=1e-5, rtol=1e-5)

    # --- multi-class path (MXU matmul, default precision, resident weight/bias) ---
    C2 = 4
    weight2 = jax.random.normal(k_w2, (D, C2), dtype=jnp.float32) * 0.02
    bias2 = jax.random.normal(k_b2, (C2,), dtype=jnp.float32) * 0.02
    emb2, out2 = predictor_forward(last_hidden_state, x_num, weight2, bias2)
    jax.block_until_ready((emb2, out2))
    ref_out2 = jnp.einsum("bd,dc->bc", ref_emb, weight2,
                          precision=jax.lax.Precision.HIGHEST) + bias2
    assert jnp.allclose(emb2, ref_emb, atol=1e-5, rtol=1e-5)
    assert jnp.allclose(out2, ref_out2, atol=1e-2, rtol=1e-2)  # default MXU precision

    # --- fallback path: D not a multiple of 128 (wrapper-side cls slice) ---
    D2 = 32
    embed_table2 = jax.random.normal(k_emb2, (vocab, D2), dtype=jnp.float32)
    lhs2 = stub_base_model(input_ids, attention_masks, embed_table2)
    w_small = weight[:D2, :]
    emb3, out3 = predictor_forward(lhs2, x_num, w_small, bias)
    jax.block_until_ready((emb3, out3))
    ref_emb3 = (lhs2 * x_num[:, :, None])[:, 0, :]
    ref_out3 = jnp.sum(ref_emb3 * w_small.reshape(1, D2), axis=-1, keepdims=True) + bias
    assert jnp.allclose(emb3, ref_emb3, atol=1e-5, rtol=1e-5)
    assert jnp.allclose(out3, ref_out3, atol=1e-5, rtol=1e-5)

    print("KERNEL_OK")
</pallas_src>

<mosaic_0001>
module attributes {stable_mosaic.version = 11 : i64} {
  func.func @kernel(%arg0: i32, %arg1: memref<2x128xf32, #tpu.memory_space<vmem>>, %arg2: memref<2x1xf32, #tpu.memory_space<vmem>>, %arg3: memref<1x128xf32, #tpu.memory_space<vmem>>, %arg4: memref<1x1xf32, #tpu.memory_space<smem>>, %arg5: memref<2x128xf32, #tpu.memory_space<vmem>>, %arg6: memref<2x1xf32, #tpu.memory_space<vmem>>) attributes {dimension_semantics = [#tpu.dimension_semantics<parallel>], iteration_bounds = array<i64: 1>, scalar_prefetch = 0 : i64, scratch_operands = 0 : i64, tpu.core_type = #tpu.core_type<tc>, window_params = [{transform_indices = @transform_0, window_bounds = array<i64: 2, 128>}, {transform_indices = @transform_1, window_bounds = array<i64: 2, 1>}, {pipeline_mode = #tpu.pipeline_mode<synchronous>, transform_indices = @transform_2, window_bounds = array<i64: 1, 128>}, {transform_indices = @transform_3, window_bounds = array<i64: 1, 1>}, {transform_indices = @transform_4, window_bounds = array<i64: 2, 128>}, {transform_indices = @transform_5, window_bounds = array<i64: 2, 1>}]} {
    %c0 = arith.constant 0 : index
    %c0_0 = arith.constant 0 : index
    %0 = vector.load %arg1[%c0, %c0_0] : memref<2x128xf32, #tpu.memory_space<vmem>>, vector<2x128xf32>
    %c0_1 = arith.constant 0 : index
    %c0_2 = arith.constant 0 : index
    %1 = vector.load %arg2[%c0_1, %c0_2] : memref<2x1xf32, #tpu.memory_space<vmem>>, vector<2x1xf32>
    %2 = vector.broadcast %1 : vector<2x1xf32> to vector<2x128xf32>
    %3 = arith.mulf %0, %2 : vector<2x128xf32>
    %c0_3 = arith.constant 0 : index
    %c0_4 = arith.constant 0 : index
    %4 = vector.load %arg5[%c0_3, %c0_4] : memref<2x128xf32, #tpu.memory_space<vmem>>, vector<2x128xf32>
    tpu.vector_store %arg5[%c0_3, %c0_4], %3 {strides = array<i32>} : memref<2x128xf32, #tpu.memory_space<vmem>>, vector<2x128xf32>,
    %c0_5 = arith.constant 0 : index
    %c0_6 = arith.constant 0 : index
    %5 = vector.load %arg3[%c0_5, %c0_6] : memref<1x128xf32, #tpu.memory_space<vmem>>, vector<1x128xf32>
    %6 = vector.broadcast %5 : vector<1x128xf32> to vector<2x128xf32>
    %7 = arith.mulf %3, %6 : vector<2x128xf32>
    %cst = arith.constant dense<0.000000e+00> : vector<2xf32>
    %8 = vector.multi_reduction <add>, %7, %cst [1] : vector<2x128xf32> to vector<2xf32>
    %9 = vector.shape_cast %8 : vector<2xf32> to vector<2x1xf32>
    %c0_7 = arith.constant 0 : index
    %c0_8 = arith.constant 0 : index
    %10 = memref.load %arg4[%c0_7, %c0_8] : memref<1x1xf32, #tpu.memory_space<smem>>
    %11 = vector.broadcast %10 : f32 to vector<2x1xf32>
    %12 = arith.addf %9, %11 : vector<2x1xf32>
    %c0_9 = arith.constant 0 : index
    %c0_10 = arith.constant 0 : index
    %13 = vector.load %arg6[%c0_9, %c0_10] : memref<2x1xf32, #tpu.memory_space<vmem>>, vector<2x1xf32>
    tpu.vector_store %arg6[%c0_9, %c0_10], %12 {strides = array<i32>} : memref<2x1xf32, #tpu.memory_space<vmem>>, vector<2x1xf32>,
    return
  }
  func.func @transform_0(%arg0: i32) -> (i32, i32) {
    %c0_i32 = arith.constant 0 : i32
    %c0_i32_0 = arith.constant 0 : i32
    return %arg0, %c0_i32 : i32, i32
  }
  func.func @transform_1(%arg0: i32) -> (i32, i32) {
    %c0_i32 = arith.constant 0 : i32
    %c0_i32_0 = arith.constant 0 : i32
    return %arg0, %c0_i32 : i32, i32
  }
  func.func @transform_2(%arg0: i32) -> (i32, i32) {
    %c0_i32 = arith.constant 0 : i32
    %c0_i32_0 = arith.constant 0 : i32
    %c0_i32_1 = arith.constant 0 : i32
    return %c0_i32, %c0_i32_0 : i32, i32
  }
  func.func @transform_3(%arg0: i32) -> (i32, i32) {
    %c0_i32 = arith.constant 0 : i32
    %c0_i32_0 = arith.constant 0 : i32
    %c0_i32_1 = arith.constant 0 : i32
    return %c0_i32, %c0_i32_0 : i32, i32
  }
  func.func @transform_4(%arg0: i32) -> (i32, i32) {
    %c0_i32 = arith.constant 0 : i32
    %c0_i32_0 = arith.constant 0 : i32
    return %arg0, %c0_i32 : i32, i32
  }
  func.func @transform_5(%arg0: i32) -> (i32, i32) {
    %c0_i32 = arith.constant 0 : i32
    %c0_i32_0 = arith.constant 0 : i32
    return %arg0, %c0_i32 : i32, i32
  }
}

</mosaic_0001>

<bundles_post_ra>
// kernel: tpu_custom_call.1
= control target key start
LH: loop header
LB: loop body
LE: loop exit
PB: predicated region body
PF: predicated region fallthrough
CT: control target
= control target key end

     0   :  { %12 = vsyncpa [#allocation4], 0  ;;  %s203_s0 = inlined_call_operand.hbm [shape: f32[2,1024], index: 0, kind: input, shape index: {}]   ;;  %s204_s1 = inlined_call_operand.vmem [shape: f32[2,1], index: 1, kind: input, shape index: {}]   ;;  %s205_s2 = inlined_call_operand.vmem [shape: f32[1,128], index: 2, kind: input, shape index: {}]   ;;  %s206_s3 = inlined_call_operand.<no memory space> [shape: f32[1,1], index: 3, kind: input, shape index: {}]   ;;  %s207_s4 = inlined_call_operand.hbm [shape: f32[2,128], index: 4, kind: output, shape index: {0}]   ;;  %s208_s5 = inlined_call_operand.vmem [shape: f32[2,1], index: 5, kind: output, shape index: {1}]  }
   0x1   :  { %13 = vsyncpa [#allocation5], 0  ;;  %s131_s18 = smov [#allocation3]   ;;  %s83_s22 = scalar_lea.hbm %s203_s0, 32 }
   0x2   :  { %s20_s19 = sshll.u32 %s131_s18, 4  ;;  %p84_p0 = scmp.ne.s32.totalorder %s203_s0, %s83_s22  ;;  %s21_s19 = int_to_ptr.vmem [resolvable:$true] %s20_s19 }
   0x3   :  { %s85_s27 = scalar_lea.hbm %s203_s0, 256  ;;  %p87_p2 = scmp.lt.u32.totalorder %s83_s22, %s203_s0 }
   0x4   :  { %p86_p1 = scmp.lt.u32.totalorder %s85_s27, %s83_s22 }
   0x6   :  { %p88_p3 = por %p87_p2, %p86_p1 }
   0x8   :  { %p89_p4 = pnand %p88_p3, %p84_p0 }
   0xa   :  { %92 = shalt.err (!%p89_p4)
}
   0xb   :  { %s93_s30 = scalar_lea.vmem %s21_s19, 32  ;;  %p98_p6 = scmp.lt.s32.totalorder %s21_s19, %s21_s19 }
   0xc   :  { %p94_p5 = scmp.ne.s32.totalorder %s21_s19, %s93_s30  ;;  %p99_p7 = scmp.lt.s32.totalorder %s93_s30, %s93_s30 }
   0xe   :  { %p100_p8 = por %p99_p7, %p98_p6 }
  0x10   :  { %p101_p9 = pnand %p100_p8, %p94_p5 }
  0x12   :  { %104 = shalt.err (!%p101_p9)
}
  0x13   :  { %23 = dma.hbm_to_vmem [thread:$0]  %s203_s0, 32, %s21_s19, [#allocation4]  }
  0x14   :  { %127 = dma.done.wait [#allocation4], 32  }
  0x15   :  { %128 = vsyncadd [#allocation4], 4294967264  ;;  %v132_v0 = vmov 0   ;;  %v34_v1 = vld [vmem:[%s204_s1] sm:$0x3]  ;;  %vm50_vm0 = vcmask 1041408  }
  0x16   :  { %82 = vset.pattern.permute.xlu0 %v132_v0  ;;  %v33_v2 = vld [vmem:[#allocation3] sm:$0x3]  ;;  %s133_s0 = smov [#allocation6]  }
  0x17   :  { %37 = vperm.xlu0 %82, %v34_v1   ;;  %v78_v4 = vld [vmem:[%s205_s2] ss:$0 sm:$0xff]  ;;  %s65_s12 = sshll.u32 %s133_s0, 4  ;;  %s66_s12 = int_to_ptr.vmem [resolvable:$true] %s65_s12 }
  0x18   :  { %s105_s13 = scalar_lea.vmem %s66_s12, 32  ;;  %p110_p11 = scmp.lt.s32.totalorder %s66_s12, %s66_s12 }
  0x19   :  { %p106_p10 = scmp.ne.s32.totalorder %s66_s12, %s105_s13  ;;  %p111_p12 = scmp.lt.s32.totalorder %s105_s13, %s105_s13 }
  0x1b   :  { %p112_p13 = por %p111_p12, %p110_p11 }
  0x1d   :  { %p113_p0 = pnand %p112_p13, %p106_p10 }
  0x96   :  { %v38_v3 = vpop.permute.xlu0 %37 }
  0x97   :  { %v40_v5 = vmul.f32 %v38_v3, %v33_v2 }
  0x99   :  { %41 = vst [vmem:[#allocation6] sm:$0x3] %v40_v5  ;;  %v49_v6 = vmul.f32 %v78_v4, %v40_v5 }
  0x9b   :  { %v51_v7 = vsel %vm50_vm0, %v49_v6, 0.0 }
  0x9c   :  { %52 = vadd.xlane.f32.xlu0 %v51_v7 }
  0x9d   :  { %116 = shalt.err (!%p113_p0)
}
  0x9e   :  { %s117_s2 = scalar_lea.hbm %s207_s4, 32 }
  0x9f   :  { %p118_p1 = scmp.ne.s32.totalorder %s207_s4, %s117_s2  ;;  %p121_p2 = scmp.lt.u32.totalorder %s117_s2, %s207_s4 }
  0xa1   :  { %p123_p3 = pnand %p121_p2, %p118_p1 }
  0xa3   :  { %126 = shalt.err (!%p123_p3)
}
  0xa4   :  { %68 = dma.vmem_to_hbm [thread:$0]  %s66_s12, 32, %s207_s4, [#allocation5]   ;;  %v55_v8 = vstv %s206_s3  ;;  %vm57_vm1 = vcmask 1024  }
 0x129   :  { %v53_v9 = vpop.xlane.xlu0 %52 }
 0x12a   :  { %v56_v10 = vadd.f32 %v55_v8, %v53_v9 }
 0x12c   :  { %58 = vst.msk [vmem:[%s208_s5] sm:$0x3] %vm57_vm1, %v56_v10 }
 0x12d   :  { %129 = dma.done.wait [#allocation5], 32  }
 0x12e   :  { %130 = vsyncadd [#allocation5], 4294967264 }
 0x12f   :  { %76 = vsyncpa [#allocation4], 1 }
 0x130   :  { %77 = vsyncpa [#allocation5], 1 }

</bundles_post_ra>
